<compile_context>
chip_gen: v6e
topology: v6e:2x2x1
jax: 0.10.0
libtpu: 0.0.40
codegen_flags: <defaults>
</compile_context>

<pallas_src>
import math
import functools

import jax
import jax.numpy as jnp
from jax.experimental import pallas as pl
from jax.experimental.pallas import tpu as pltpu

_NEG_INF = -1e9


# --------------------------------------------------------------------------
# Small helpers
# --------------------------------------------------------------------------
def _round_up(x, m):
    return -(-x // m) * m


def _largest_tile(n, cap, mult=8):
    """Largest divisor of n that is <= cap and a multiple of `mult` (or == n)."""
    cap = max(min(n, cap), 1)
    for t in range(cap, 0, -1):
        if n % t == 0 and (t % mult == 0 or t == n):
            return t
    return n


def _vmem_budget():
    """Generation-aware VMEM budget for a kernel's working set (bytes)."""
    try:
        phys = int(pltpu.get_tpu_info().vmem_capacity_bytes)
    except Exception:
        try:
            kind = jax.devices()[0].device_kind.lower()
        except Exception:
            kind = ""
        phys = 64 * 1024 * 1024 if "7" in kind else 128 * 1024 * 1024
    if phys <= 64 * 1024 * 1024:          # v7x: 64 MiB/TC -> leave headroom
        return 48 * 1024 * 1024
    return 100 * 1024 * 1024              # v5e / v6e: 128 MiB physical


def _chip_has_bf16_eup():
    """v6e/v7x have bf16 EUP/VPU; v2-v5 do not."""
    try:
        kind = jax.devices()[0].device_kind.lower()
    except Exception:
        return False
    return not any(t in kind for t in ("v2", "v3", "v4", "v5"))


def fuse_qkv_params(params, num_heads, mxu_dtype=jnp.bfloat16):
    """Pre-fuse Q/K/V weights once, outside the per-call wrapper.

    The 1/sqrt(head_dim) attention scale is folded into the Q projection so
    the attention kernel never multiplies the scores.
    """
    all_head = params["wq"].shape[1]
    dh = all_head // num_heads
    scale = 1.0 / math.sqrt(dh)
    wqkv = jnp.concatenate(
        [params["wq"] * scale, params["wk"], params["wv"]], axis=1
    ).astype(mxu_dtype)
    bqkv = jnp.concatenate(
        [params["bq"] * scale, params["bk"], params["bv"]], axis=0
    ).reshape(1, 3 * all_head).astype(jnp.float32)
    return {"wqkv": wqkv, "bqkv": bqkv}


# --------------------------------------------------------------------------
# Kernel 1: fused Q/K/V projection.  One (TR, H) @ (H, 3H) MXU matmul per grid
# step (operands in the weight dtype, f32 accumulation), three lane-dense
# (TR, H) stores in the input dtype.
# --------------------------------------------------------------------------
def _qkv_proj_kernel(x_ref, w_ref, b_ref, q_ref, k_ref, v_ref, *, hidden):
    x = x_ref[...].astype(w_ref.dtype)
    y = jnp.dot(x, w_ref[...], preferred_element_type=jnp.float32)
    y = y + b_ref[...]
    q_ref[...] = y[:, :hidden].astype(q_ref.dtype)
    k_ref[...] = y[:, hidden:2 * hidden].astype(k_ref.dtype)
    v_ref[...] = y[:, 2 * hidden:].astype(v_ref.dtype)


# --------------------------------------------------------------------------
# Kernel 2: scaled-dot-product attention for one (batch, query-tile) step.
# K/V are relaid out to (nH, S, dh) once per batch into VMEM scratch; heads
# are batched into single einsum contractions; context store is lane-dense.
# --------------------------------------------------------------------------
def _attention_kernel(mask_ref, q_ref, k_ref, v_ref, ctx_ref, *rest,
                      num_heads, head_dim, write_probs, mxu_dtype, exp_dtype,
                      exact_recip):
    if write_probs:
        probs_ref, kh_sc, vh_sc = rest
    else:
        kh_sc, vh_sc = rest

    TQ = q_ref.shape[1]
    S = k_ref.shape[1]
    H = num_heads * head_dim

    # The K/V block index only changes with the batch axis, so the head
    # relayout (XLU/VMEM-copy heavy) is cached per batch and reused for every
    # query tile (the qi grid axis is "arbitrary").
    @pl.when(pl.program_id(1) == 0)
    def _():
        kh_sc[...] = jnp.transpose(
            k_ref[0].reshape(S, num_heads, head_dim), (1, 0, 2)).astype(kh_sc.dtype)
        vh_sc[...] = jnp.transpose(
            v_ref[0].reshape(S, num_heads, head_dim), (1, 0, 2)).astype(vh_sc.dtype)

    qh = jnp.transpose(
        q_ref[0].reshape(TQ, num_heads, head_dim), (1, 0, 2)).astype(mxu_dtype)

    # Batched-head score contraction; 1/sqrt(dh) already folded into Q weights.
    scores = jnp.einsum('hqd,hkd->hqk', qh, kh_sc[...],
                        preferred_element_type=jnp.float32)
    scores = scores + mask_ref[0, 0]                 # (nH,TQ,S) + (1|TQ, S)

    # Numerically-stable softmax (exp optionally in bf16 on v6e/v7x).
    s = scores.astype(exp_dtype)
    m = jnp.max(s, axis=-1, keepdims=True)
    e = jnp.exp(s - m)
    l = jnp.sum(e.astype(jnp.float32), axis=-1, keepdims=True)
    if exact_recip:
        inv = 1.0 / l                                 # exact: user-facing probs
    else:
        inv = pl.reciprocal(l, approx=True)           # EUP slot, context only
    p = e * inv.astype(e.dtype)

    if write_probs:
        probs_ref[0] = p.astype(probs_ref.dtype)

    # TODO(synk): eval-mode attention-prob dropout is identity; head_mask,
    # cross-attention / past_key_value concat and relative position embeddings
    # are not wired into this kernel.
    ctx = jnp.einsum('hqk,hkd->hqd', p.astype(mxu_dtype), vh_sc[...],
                     preferred_element_type=jnp.float32)
    ctx_ref[0] = jnp.transpose(ctx, (1, 0, 2)).reshape(TQ, H).astype(ctx_ref.dtype)


# --------------------------------------------------------------------------
# Wrapper
# --------------------------------------------------------------------------
def bert_self_attention(hidden_states, attention_mask, params, *, num_heads,
                        output_attentions=False, mxu_dtype=jnp.bfloat16,
                        softmax_dtype=None, q_tile=256, row_tile=1024):
    """Returns (context, [attention_probs,] (key_layer, value_layer))."""
    B, S, H = hidden_states.shape
    assert H % num_heads == 0
    dh = H // num_heads
    nH = num_heads
    out_dtype = hidden_states.dtype

    # Pre-fused weights preferred (one-time concat/cast); fall back to fusing here.
    if "wqkv" in params:
        wqkv, bqkv = params["wqkv"], params["bqkv"]
    else:
        fused = fuse_qkv_params(params, num_heads, mxu_dtype=mxu_dtype)
        wqkv, bqkv = fused["wqkv"], fused["bqkv"]

    ci = jnp.dtype(out_dtype).itemsize          # q/k/v/x HBM itemsize
    cw = jnp.dtype(wqkv.dtype).itemsize
    cm = jnp.dtype(mxu_dtype).itemsize
    co = jnp.dtype(out_dtype).itemsize
    budget = _vmem_budget()

    # ---- pad the sequence so every block satisfies the (8,128) rule ----
    S_pad = _round_up(S, 128) if S >= 128 else _round_up(S, 8)
    x = hidden_states
    if S_pad != S:
        x = jnp.pad(x, ((0, 0), (0, S_pad - S), (0, 0)))

    if attention_mask is None:
        attention_mask = jnp.zeros((B, 1, 1, S), jnp.float32)
    attention_mask = attention_mask.astype(jnp.float32)
    assert attention_mask.shape[1] == 1, "per-head masks are not supported"
    q_broadcast = attention_mask.shape[2] == 1
    if S_pad != S:
        attention_mask = jnp.pad(
            attention_mask, ((0, 0), (0, 0), (0, 0), (0, S_pad - S)),
            constant_values=_NEG_INF)
        if not q_broadcast:
            attention_mask = jnp.pad(
                attention_mask, ((0, 0), (0, 0), (0, S_pad - S), (0, 0)))

    # ---------------- fused QKV projection ----------------
    rows = B * S_pad
    x2 = x.reshape(rows, H)
    TR = _largest_tile(rows, row_tile)
    while True:
        proj_work = (2 * TR * H * ci                 # x tile (double buffered)
                     + H * 3 * H * cw + 3 * H * 4    # weights/bias (Buffered(1))
                     + 3 * 2 * TR * H * co           # q/k/v output tiles
                     + TR * 3 * H * 4)               # f32 accumulator
        if proj_work <= budget or TR <= 8:
            break
        nTR = _largest_tile(rows, TR // 2)
        if nTR >= TR:
            break
        TR = nTR

    proj_cost = pl.CostEstimate(
        flops=2 * rows * H * (3 * H), transcendentals=0,
        bytes_accessed=(rows * H * ci + H * 3 * H * cw + 3 * H * 4
                        + 3 * rows * H * co))

    q2, k2, v2 = pl.pallas_call(
        functools.partial(_qkv_proj_kernel, hidden=H),
        out_shape=tuple(jax.ShapeDtypeStruct((rows, H), out_dtype)
                        for _ in range(3)),
        grid_spec=pltpu.PrefetchScalarGridSpec(
            num_scalar_prefetch=0,
            grid=(rows // TR,),
            in_specs=[
                pl.BlockSpec((TR, H), lambda r: (r, 0)),
                # constant-index blocks: single-buffered to save VMEM
                pl.BlockSpec((H, 3 * H), lambda r: (0, 0),
                             pipeline_mode=pl.Buffered(1)),
                pl.BlockSpec((1, 3 * H), lambda r: (0, 0),
                             pipeline_mode=pl.Buffered(1)),
            ],
            out_specs=[pl.BlockSpec((TR, H), lambda r: (r, 0))] * 3,
        ),
        compiler_params=pltpu.CompilerParams(
            dimension_semantics=("parallel",),
            vmem_limit_bytes=int(min(budget,
                                     max(2 * proj_work, 32 * 1024 * 1024)))),
        cost_estimate=proj_cost,
    )(x2, wqkv, bqkv)

    q = q2.reshape(B, S_pad, H)
    k = k2.reshape(B, S_pad, H)
    v = v2.reshape(B, S_pad, H)

    # ---------------- attention call ----------------
    TQ = _largest_tile(S_pad, q_tile)
    kv_buf = 2
    while True:
        attn_work = (2 * TQ * H * ci                      # q tile
                     + kv_buf * 2 * S_pad * H * ci        # K + V blocks
                     + 2 * (1 if q_broadcast else TQ) * S_pad * 4   # mask
                     + 2 * TQ * H * co                    # ctx out tile
                     + 2 * nH * S_pad * dh * cm           # cached K/V heads
                     + 3 * nH * TQ * S_pad * 4)           # score/exp/prob temps
        if output_attentions:
            attn_work += 2 * nH * TQ * S_pad * 4
        if attn_work <= budget:
            break
        if kv_buf == 2:
            kv_buf = 1                                    # single-buffer K/V
            continue
        nTQ = _largest_tile(S_pad, TQ // 2)
        if nTQ >= TQ:
            break  # TODO(synk): flash-style S-tiling for very long sequences.
        TQ = nTQ
    NQ = S_pad // TQ

    # Softmax exp dtype: bf16 on v6e/v7x for the context-only bf16 path.
    if softmax_dtype is None:
        use_bf16_exp = (jnp.dtype(mxu_dtype) == jnp.dtype(jnp.bfloat16)
                        and not output_attentions and _chip_has_bf16_eup())
        exp_dtype = jnp.bfloat16 if use_bf16_exp else jnp.float32
    else:
        exp_dtype = softmax_dtype

    kernel = functools.partial(
        _attention_kernel, num_heads=nH, head_dim=dh,
        write_probs=output_attentions, mxu_dtype=mxu_dtype,
        exp_dtype=exp_dtype, exact_recip=output_attentions)

    if q_broadcast:
        mask_spec = pl.BlockSpec((1, 1, 1, S_pad), lambda b, qi: (b, 0, 0, 0))
    else:
        mask_spec = pl.BlockSpec((1, 1, TQ, S_pad), lambda b, qi: (b, 0, qi, 0))

    kv_kwargs = {"pipeline_mode": pl.Buffered(1)} if kv_buf == 1 else {}
    k_spec = pl.BlockSpec((1, S_pad, H), lambda b, qi: (b, 0, 0), **kv_kwargs)
    v_spec = pl.BlockSpec((1, S_pad, H), lambda b, qi: (b, 0, 0), **kv_kwargs)

    ctx_shape = jax.ShapeDtypeStruct((B, S_pad, H), out_dtype)
    ctx_spec = pl.BlockSpec((1, TQ, H), lambda b, qi: (b, qi, 0))
    if output_attentions:
        out_shape = (ctx_shape,
                     jax.ShapeDtypeStruct((B, nH, S_pad, S_pad), jnp.float32))
        out_specs = (ctx_spec,
                     pl.BlockSpec((1, nH, TQ, S_pad),
                                  lambda b, qi: (b, 0, qi, 0)))
    else:
        out_shape = ctx_shape
        out_specs = ctx_spec

    attn_cost = pl.CostEstimate(
        flops=4 * B * nH * S_pad * S_pad * dh,
        transcendentals=B * nH * S_pad * S_pad,
        bytes_accessed=(3 * B * S_pad * H * ci + int(attention_mask.size) * 4
                        + B * S_pad * H * co
                        + (B * nH * S_pad * S_pad * 4 if output_attentions else 0)))

    outs = pl.pallas_call(
        kernel,
        out_shape=out_shape,
        grid_spec=pltpu.PrefetchScalarGridSpec(
            num_scalar_prefetch=0,
            grid=(B, NQ),
            in_specs=[mask_spec,
                      pl.BlockSpec((1, TQ, H), lambda b, qi: (b, qi, 0)),
                      k_spec, v_spec],
            out_specs=out_specs,
            scratch_shapes=[pltpu.VMEM((nH, S_pad, dh), mxu_dtype),
                            pltpu.VMEM((nH, S_pad, dh), mxu_dtype)],
        ),
        compiler_params=pltpu.CompilerParams(
            # b "parallel" (megacore shards batches), qi "arbitrary" so the
            # per-batch cached K/V head relayout is reused across query tiles.
            dimension_semantics=("parallel", "arbitrary"),
            vmem_limit_bytes=int(min(budget,
                                     max(2 * attn_work, 32 * 1024 * 1024)))),
        cost_estimate=attn_cost,
    )(attention_mask, q, k, v)

    # Slice off the padded rows; head split/transpose for past_key_value is
    # XLA-side layout plumbing (keeps every kernel store lane-dense) and the
    # cache keeps the input dtype.
    if output_attentions:
        ctx_p, probs_p = outs
    else:
        ctx_p = outs
    ctx = ctx_p[:, :S, :]
    key_layer = k[:, :S, :].reshape(B, S, nH, dh).transpose(0, 2, 1, 3)
    value_layer = v[:, :S, :].reshape(B, S, nH, dh).transpose(0, 2, 1, 3)

    if output_attentions:
        probs = probs_p[:, :, :S, :S]
        return ctx, probs, (key_layer, value_layer)
    return ctx, (key_layer, value_layer)


# --------------------------------------------------------------------------
# Pure-JAX reference mirroring the PyTorch forward (eval mode)
# --------------------------------------------------------------------------
def _reference(hidden_states, attention_mask, params, *, num_heads):
    B, S, H = hidden_states.shape
    dh = H // num_heads

    def split_heads(x):
        return x.reshape(B, S, num_heads, dh).transpose(0, 2, 1, 3)

    q = split_heads(hidden_states @ params["wq"] + params["bq"])
    k = split_heads(hidden_states @ params["wk"] + params["bk"])
    v = split_heads(hidden_states @ params["wv"] + params["bv"])

    scores = jnp.einsum("bhqd,bhkd->bhqk", q, k) / math.sqrt(dh)
    scores = scores + attention_mask
    probs = jax.nn.softmax(scores, axis=-1)
    ctx = jnp.einsum("bhqk,bhkd->bhqd", probs, v)
    ctx = ctx.transpose(0, 2, 1, 3).reshape(B, S, H)
    return ctx, probs, (k, v)


if __name__ == "__main__":
    # Small config: batch=2, seq=8, hidden=32, heads=4 (head_dim=8)
    B, S, H, NH = 2, 8, 32, 4

    key = jax.random.PRNGKey(0)
    ks = jax.random.split(key, 8)

    wscale = 0.02
    params = {
        "wq": wscale * jax.random.normal(ks[0], (H, H), jnp.float32),
        "bq": wscale * jax.random.normal(ks[1], (H,), jnp.float32),
        "wk": wscale * jax.random.normal(ks[2], (H, H), jnp.float32),
        "bk": wscale * jax.random.normal(ks[3], (H,), jnp.float32),
        "wv": wscale * jax.random.normal(ks[4], (H, H), jnp.float32),
        "bv": wscale * jax.random.normal(ks[5], (H,), jnp.float32),
    }

    hidden_states = jax.random.normal(ks[6], (B, S, H), jnp.float32)

    # HF-style extended additive attention mask: (B,1,1,S), 0 keep / -10000 pad.
    pad = (jax.random.uniform(ks[7], (B, S)) > 0.8).astype(jnp.float32)
    attention_mask = (pad * -10000.0).reshape(B, 1, 1, S)

    ctx_ref, probs_ref, (k_ref, v_ref) = _reference(
        hidden_states, attention_mask, params, num_heads=NH)

    # f32-MXU path (exact reciprocal), probs output, pre-fused weights.
    fused_f32 = fuse_qkv_params(params, NH, mxu_dtype=jnp.float32)
    ctx, probs, (kl, vl) = bert_self_attention(
        hidden_states, attention_mask, fused_f32, num_heads=NH,
        output_attentions=True, mxu_dtype=jnp.float32)
    jax.block_until_ready(ctx)
    assert jnp.allclose(kl, k_ref, rtol=1e-3, atol=1e-4), "key_layer mismatch"
    assert jnp.allclose(vl, v_ref, rtol=1e-3, atol=1e-4), "value_layer mismatch"
    assert jnp.allclose(probs, probs_ref, rtol=1e-2, atol=1e-3), "probs mismatch"
    assert jnp.allclose(ctx, ctx_ref, rtol=1e-2, atol=1e-3), "context mismatch"

    # Default path: raw (unfused) params, no probs HBM writeback.
    ctx2, _ = bert_self_attention(hidden_states, attention_mask, params,
                                  num_heads=NH, output_attentions=False,
                                  mxu_dtype=jnp.float32)
    jax.block_until_ready(ctx2)
    assert jnp.allclose(ctx2, ctx_ref, rtol=1e-2, atol=1e-3), "ctx(no-probs) mismatch"

    # bf16-MXU path (default on v6e/v7x); looser tolerance.
    fused_bf16 = fuse_qkv_params(params, NH)  # bf16 fused weights
    ctx_bf, probs_bf, _ = bert_self_attention(
        hidden_states, attention_mask, fused_bf16, num_heads=NH,
        output_attentions=True)
    jax.block_until_ready(ctx_bf)
    assert jnp.allclose(ctx_bf, ctx_ref, rtol=5e-2, atol=5e-3), "bf16 ctx mismatch"

    # bf16-MXU, context-only (exercises approx reciprocal + bf16 exp on v6e/v7x).
    ctx_bf2, _ = bert_self_attention(hidden_states, attention_mask, fused_bf16,
                                     num_heads=NH, output_attentions=False)
    jax.block_until_ready(ctx_bf2)
    assert jnp.allclose(ctx_bf2, ctx_ref, rtol=5e-2, atol=5e-3), "bf16 ctx2 mismatch"

    # Non-8-multiple sequence length + (B,1,S,S) mask exercises the padding
    # path and the per-query-row mask BlockSpec.
    S2 = 12
    k2a, k2b = jax.random.split(jax.random.PRNGKey(1))
    hs2 = jax.random.normal(k2a, (B, S2, H), jnp.float32)
    mask2 = ((jax.random.uniform(k2b, (B, 1, S2, S2)) > 0.85)
             .astype(jnp.float32) * -10000.0)
    ctx_ref2, probs_ref2, _ = _reference(hs2, mask2, params, num_heads=NH)
    ctx_p, probs_p, _ = bert_self_attention(hs2, mask2, fused_f32, num_heads=NH,
                                            output_attentions=True,
                                            mxu_dtype=jnp.float32)
    jax.block_until_ready(ctx_p)
    assert jnp.allclose(probs_p, probs_ref2, rtol=1e-2, atol=1e-3), "padded probs mismatch"
    assert jnp.allclose(ctx_p, ctx_ref2, rtol=1e-2, atol=1e-3), "padded ctx mismatch"

    print("KERNEL_OK")
</pallas_src>

<mosaic_0001>
module attributes {stable_mosaic.version = 11 : i64} {
  func.func @_qkv_proj_kernel(%arg0: i32, %arg1: memref<16x32xf32, #tpu.memory_space<vmem>>, %arg2: memref<32x96xf32, #tpu.memory_space<vmem>>, %arg3: memref<1x96xf32, #tpu.memory_space<vmem>>, %arg4: memref<16x32xf32, #tpu.memory_space<vmem>>, %arg5: memref<16x32xf32, #tpu.memory_space<vmem>>, %arg6: memref<16x32xf32, #tpu.memory_space<vmem>>) attributes {dimension_semantics = [#tpu.dimension_semantics<parallel>], iteration_bounds = array<i64: 1>, scalar_prefetch = 0 : i64, scratch_operands = 0 : i64, tpu.core_type = #tpu.core_type<tc>, window_params = [{transform_indices = @transform_0, window_bounds = array<i64: 16, 32>}, {pipeline_mode = #tpu.pipeline_mode<synchronous>, transform_indices = @transform_1, window_bounds = array<i64: 32, 96>}, {pipeline_mode = #tpu.pipeline_mode<synchronous>, transform_indices = @transform_2, window_bounds = array<i64: 1, 96>}, {transform_indices = @transform_3, window_bounds = array<i64: 16, 32>}, {transform_indices = @transform_4, window_bounds = array<i64: 16, 32>}, {transform_indices = @transform_5, window_bounds = array<i64: 16, 32>}]} {
    %c0 = arith.constant 0 : index
    %c0_0 = arith.constant 0 : index
    %0 = vector.load %arg1[%c0, %c0_0] : memref<16x32xf32, #tpu.memory_space<vmem>>, vector<16x32xf32>
    %c0_1 = arith.constant 0 : index
    %c0_2 = arith.constant 0 : index
    %1 = vector.load %arg2[%c0_1, %c0_2] : memref<32x96xf32, #tpu.memory_space<vmem>>, vector<32x96xf32>
    %cst = arith.constant dense<0.000000e+00> : vector<16x96xf32>
    %2 = tpu.matmul %0, %1, %cst {dimension_numbers = #tpu.dot_dimension_numbers<[1], [0], [0], [1], [0, 0, 1, 1], [], []>} : vector<16x32xf32>, vector<32x96xf32>, vector<16x96xf32> -> vector<16x96xf32>
    %c0_3 = arith.constant 0 : index
    %c0_4 = arith.constant 0 : index
    %3 = vector.load %arg3[%c0_3, %c0_4] : memref<1x96xf32, #tpu.memory_space<vmem>>, vector<1x96xf32>
    %4 = vector.broadcast %3 : vector<1x96xf32> to vector<16x96xf32>
    %5 = arith.addf %2, %4 : vector<16x96xf32>
    %6 = vector.extract_strided_slice %5 {offsets = [0, 0], sizes = [16, 32], strides = [1, 1]} : vector<16x96xf32> to vector<16x32xf32>
    %c0_5 = arith.constant 0 : index
    %c0_6 = arith.constant 0 : index
    %7 = vector.load %arg4[%c0_5, %c0_6] : memref<16x32xf32, #tpu.memory_space<vmem>>, vector<16x32xf32>
    tpu.vector_store %arg4[%c0_5, %c0_6], %6 {strides = array<i32>} : memref<16x32xf32, #tpu.memory_space<vmem>>, vector<16x32xf32>,
    %8 = vector.extract_strided_slice %5 {offsets = [0, 32], sizes = [16, 32], strides = [1, 1]} : vector<16x96xf32> to vector<16x32xf32>
    %c0_7 = arith.constant 0 : index
    %c0_8 = arith.constant 0 : index
    %9 = vector.load %arg5[%c0_7, %c0_8] : memref<16x32xf32, #tpu.memory_space<vmem>>, vector<16x32xf32>
    tpu.vector_store %arg5[%c0_7, %c0_8], %8 {strides = array<i32>} : memref<16x32xf32, #tpu.memory_space<vmem>>, vector<16x32xf32>,
    %10 = vector.extract_strided_slice %5 {offsets = [0, 64], sizes = [16, 32], strides = [1, 1]} : vector<16x96xf32> to vector<16x32xf32>
    %c0_9 = arith.constant 0 : index
    %c0_10 = arith.constant 0 : index
    %11 = vector.load %arg6[%c0_9, %c0_10] : memref<16x32xf32, #tpu.memory_space<vmem>>, vector<16x32xf32>
    tpu.vector_store %arg6[%c0_9, %c0_10], %10 {strides = array<i32>} : memref<16x32xf32, #tpu.memory_space<vmem>>, vector<16x32xf32>,
    return
  }
  func.func @transform_0(%arg0: i32) -> (i32, i32) {
    %c0_i32 = arith.constant 0 : i32
    %c0_i32_0 = arith.constant 0 : i32
    return %arg0, %c0_i32 : i32, i32
  }
  func.func @transform_1(%arg0: i32) -> (i32, i32) {
    %c0_i32 = arith.constant 0 : i32
    %c0_i32_0 = arith.constant 0 : i32
    %c0_i32_1 = arith.constant 0 : i32
    return %c0_i32, %c0_i32_0 : i32, i32
  }
  func.func @transform_2(%arg0: i32) -> (i32, i32) {
    %c0_i32 = arith.constant 0 : i32
    %c0_i32_0 = arith.constant 0 : i32
    %c0_i32_1 = arith.constant 0 : i32
    return %c0_i32, %c0_i32_0 : i32, i32
  }
  func.func @transform_3(%arg0: i32) -> (i32, i32) {
    %c0_i32 = arith.constant 0 : i32
    %c0_i32_0 = arith.constant 0 : i32
    return %arg0, %c0_i32 : i32, i32
  }
  func.func @transform_4(%arg0: i32) -> (i32, i32) {
    %c0_i32 = arith.constant 0 : i32
    %c0_i32_0 = arith.constant 0 : i32
    return %arg0, %c0_i32 : i32, i32
  }
  func.func @transform_5(%arg0: i32) -> (i32, i32) {
    %c0_i32 = arith.constant 0 : i32
    %c0_i32_0 = arith.constant 0 : i32
    return %arg0, %c0_i32 : i32, i32
  }
}

</mosaic_0001>

<bundles_post_ra>
// kernel: tpu_custom_call.1
= control target key start
LH: loop header
LB: loop body
LE: loop exit
PB: predicated region body
PF: predicated region fallthrough
CT: control target
= control target key end

     0   :  { %11 = vsyncpa [#allocation3], 0  ;;  %s428_s0 = inlined_call_operand.hbm [shape: f32[16,32], index: 0, kind: input, shape index: {}]   ;;  %s429_s1 = inlined_call_operand.hbm [shape: f32[32,96], index: 1, kind: input, shape index: {}]   ;;  %s430_s2 = inlined_call_operand.vmem [shape: f32[1,96], index: 2, kind: input, shape index: {}]   ;;  %s431_s3 = inlined_call_operand.hbm [shape: f32[16,32], index: 3, kind: output, shape index: {0}]   ;;  %s432_s4 = inlined_call_operand.hbm [shape: f32[16,32], index: 4, kind: output, shape index: {1}]   ;;  %s433_s5 = inlined_call_operand.hbm [shape: f32[16,32], index: 5, kind: output, shape index: {2}]  }
   0x1   :  { %12 = vsyncpa [#allocation6], 0 }
   0x2   :  { %13 = vsyncpa [#allocation4], 0 }
   0x3   :  { %14 = vsyncpa [#allocation9], 0  ;;  %s348_s18 = smov [#allocation2]  }
   0x4   :  { %s20_s19 = sshll.u32 %s348_s18, 4  ;;  %s21_s19 = int_to_ptr.vmem [resolvable:$true] %s20_s19 }
   0x5   :  { %s248_s20 = scalar_lea.vmem %s21_s19, 256  ;;  %p253_p1 = scmp.lt.s32.totalorder %s21_s19, %s21_s19 }
   0x6   :  { %p249_p0 = scmp.ne.s32.totalorder %s21_s19, %s248_s20  ;;  %p254_p2 = scmp.lt.s32.totalorder %s248_s20, %s248_s20 }
   0x8   :  { %p255_p3 = por %p254_p2, %p253_p1 }
   0xa   :  { %p256_p4 = pnand %p255_p3, %p249_p0 }
   0xc   :  { %259 = shalt.err (!%p256_p4)
}
   0xd   :  { %s349_s21 = smov 128   ;;  %s350_s22 = smov 8  }
   0xe   :  { %26 = dma.hbm_to_vmem [thread:$0]  %s428_s0, 256, %s21_s19, [#allocation3], %s349_s21, %s349_s21, %s350_s22  }
   0xf   :  { %s351_s25 = smov [#allocation5]  }
  0x10   :  { %s32_s26 = sshll.u32 %s351_s25, 4  ;;  %s33_s26 = int_to_ptr.vmem [resolvable:$true] %s32_s26 }
  0x11   :  { %s268_s27 = scalar_lea.vmem %s33_s26, 512  ;;  %p273_p6 = scmp.lt.s32.totalorder %s33_s26, %s33_s26 }
  0x12   :  { %p269_p5 = scmp.ne.s32.totalorder %s33_s26, %s268_s27  ;;  %p274_p7 = scmp.lt.s32.totalorder %s268_s27, %s268_s27 }
  0x14   :  { %p275_p8 = por %p274_p7, %p273_p6 }
  0x16   :  { %p276_p9 = pnand %p275_p8, %p269_p5 }
  0x18   :  { %279 = shalt.err (!%p276_p9)
}
  0x19   :  { %38 = dma.hbm_to_vmem [thread:$0]  %s429_s1, 512, %s33_s26, [#allocation6], %s349_s21, %s349_s21, %s350_s22  }
  0x1a   :  { %340 = dma.done.wait [#allocation3], 256  }
  0x1b   :  { %341 = vsyncadd [#allocation3], 4294967040 }
  0x1c   :  { %342 = dma.done.wait [#allocation6], 512  }
  0x1d   :  { %343 = vsyncadd [#allocation6], 4294966784  ;;  %vm60_vm0 = vcmask 261120   ;;  %v52_v0 = vld [vmem:[#allocation5 + $0x18] sm:$0xff]  ;;  %v51_v1 = vld [vmem:[#allocation5 + $0x10] sm:$0xff]  ;;  %s352_s30 = smov [#allocation7]  }
  0x1e   :  { %220 = vmatprep.subr.mxu0 %v52_v0  ;;  %v47_v2 = vld [vmem:[#allocation2] sm:$0xff]  ;;  %v50_v3 = vld [vmem:[#allocation5 + $0x8] sm:$0xff]  ;;  %v49_v4 = vld [vmem:[#allocation5] sm:$0xff]  ;;  %s167_s6 = sshll.u32 %s352_s30, 4  ;;  %s353_s7 = smov 64   ;;  %s168_s6 = int_to_ptr.vmem [resolvable:$true] %s167_s6 }
  0x1f   :  { %221 = vmatpush3.msra.mxu0 %v52_v0  ;;  %228 = vmatprep.mubr.msk.f32.mxu0 %vm60_vm0, %v47_v2  ;;  %v48_v5 = vld [vmem:[#allocation2 + $0x8] sm:$0xff]  ;;  %v211_v6 = vld [vmem:[%s430_s2] ss:$0 sm:$0xff]  ;;  %s354_s8 = smov 96   ;;  %s280_s9 = scalar_lea.vmem %s168_s6, 256 }
  0x20   :  { %222 = vmatprep.subr.mxu0 %v51_v1  ;;  %p281_p10 = scmp.ne.s32.totalorder %s168_s6, %s280_s9  ;;  %p285_p11 = scmp.lt.s32.totalorder %s168_s6, %s168_s6 }
  0x21   :  { %223 = vmatpush3.msra.mxu0 %v51_v1  ;;  %p286_p12 = scmp.lt.s32.totalorder %s280_s9, %s280_s9 }
  0x22   :  { %224 = vmatprep.subr.mxu0 %v50_v3 }
  0x23   :  { %225 = vmatpush3.msra.mxu0 %v50_v3  ;;  %p287_p13 = por %p286_p12, %p285_p11 }
  0x24   :  { %226 = vmatprep.subr.mxu0 %v49_v4 }
  0x25   :  { %227 = vmatpush3.msra.mxu0 %v49_v4  ;;  %p288_p0 = pnand %p287_p13, %p281_p10 }
  0x26   :  { %229 = vmatmul.mubr.msk.f32.vlgmr.msra.gmra.mxu0 %vm60_vm0, %v48_v5 }
  0xe6   :  { %v230_v7 = vpop.f32.mrf.mxu0 }
  0xe7   :  { %v139_v8 = vadd.f32 %v230_v7, %v211_v6 }
  0xe8   :  { %v133_v9 = vpop.f32.mrf.mxu0 }
  0xe9   :  { %143 = vst.msk [vmem:[#allocation7 + $0x8] sm:$0xff] %vm60_vm0, %v139_v8  ;;  %v134_v10 = vadd.f32 %v211_v6, %v133_v9 }
  0xeb   :  { %142 = vst.msk [vmem:[#allocation7] sm:$0xff] %vm60_vm0, %v134_v10  ;;  %154 = vrot.lane.b32.xlu1 %v134_v10, %s353_s7  ;;  %146 = vrot.lane.b32.xlu0 %v134_v10, %s354_s8 }
  0xec   :  { %291 = shalt.err (!%p288_p0)
}
  0xed   :  { %173 = dma.vmem_to_hbm [thread:$0]  %s168_s6, 256, %s431_s3, [#allocation4], %s349_s21, %s349_s21, %s350_s22  }
  0xee   :  { %s355_s11 = smov [#allocation8]   ;;  %s356_s13 = smov [#allocation10]  }
  0xef   :  { %156 = vrot.lane.b32.xlu1 %v139_v8, %s353_s7  ;;  %148 = vrot.lane.b32.xlu0 %v139_v8, %s354_s8  ;;  %s179_s12 = sshll.u32 %s355_s11, 4  ;;  %s191_s14 = sshll.u32 %s356_s13, 4  ;;  %s180_s12 = int_to_ptr.vmem [resolvable:$true] %s179_s12  ;;  %s192_s14 = int_to_ptr.vmem [resolvable:$true] %s191_s14 }
  0xf0   :  { %s300_s3 = scalar_lea.vmem %s180_s12, 256  ;;  %p305_p2 = scmp.lt.s32.totalorder %s180_s12, %s180_s12 }
  0xf1   :  { %p301_p1 = scmp.ne.s32.totalorder %s180_s12, %s300_s3  ;;  %p306_p3 = scmp.lt.s32.totalorder %s300_s3, %s300_s3 }
  0xf3   :  { %p307_p4 = por %p306_p3, %p305_p2 }
  0xf5   :  { %p308_p5 = pnand %p307_p4, %p301_p1 }
 0x15d   :  { %v155_v11 = vpop.permute.xlu1 %154  ;;  %v147_v12 = vpop.permute.xlu0 %146 }
 0x15e   :  { %160 = vst.msk [vmem:[#allocation10] sm:$0xff] %vm60_vm0, %v155_v11  ;;  %152 = vst.msk [vmem:[#allocation8] sm:$0xff] %vm60_vm0, %v147_v12 }
 0x161   :  { %v157_v13 = vpop.permute.xlu1 %156  ;;  %v149_v14 = vpop.permute.xlu0 %148 }
 0x162   :  { %161 = vst.msk [vmem:[#allocation10 + $0x8] sm:$0xff] %vm60_vm0, %v157_v13  ;;  %153 = vst.msk [vmem:[#allocation8 + $0x8] sm:$0xff] %vm60_vm0, %v149_v14 }
 0x163   :  { %311 = shalt.err (!%p308_p5)
}
 0x164   :  { %185 = dma.vmem_to_hbm [thread:$0]  %s180_s12, 256, %s432_s4, [#allocation9], %s349_s21, %s349_s21, %s350_s22  }
 0x165   :  { %s320_s17 = scalar_lea.vmem %s192_s14, 256  ;;  %p325_p7 = scmp.lt.s32.totalorder %s192_s14, %s192_s14 }
 0x166   :  { %p321_p6 = scmp.ne.s32.totalorder %s192_s14, %s320_s17  ;;  %p326_p8 = scmp.lt.s32.totalorder %s320_s17, %s320_s17 }
 0x168   :  { %p327_p9 = por %p326_p8, %p325_p7 }
 0x16a   :  { %p328_p10 = pnand %p327_p9, %p321_p6 }
 0x16c   :  { %331 = shalt.err (!%p328_p10)
}
 0x16d   :  { %197 = dma.vmem_to_hbm [thread:$0]  %s192_s14, 256, %s433_s5, [#allocation9], %s349_s21, %s349_s21, %s350_s22  }
 0x16e   :  { %344 = dma.done.wait [#allocation4], 256  }
 0x16f   :  { %345 = vsyncadd [#allocation4], 4294967040 }
 0x170   :  { %346 = dma.done.wait [#allocation9], 512  }
 0x171   :  { %347 = vsyncadd [#allocation9], 4294966784 }
 0x172   :  { %207 = vsyncpa [#allocation3], 1 }
 0x173   :  { %208 = vsyncpa [#allocation6], 1 }
 0x174   :  { %209 = vsyncpa [#allocation4], 1 }
 0x175   :  { %210 = vsyncpa [#allocation9], 1 }

</bundles_post_ra>
